<compile_context>
chip_gen: v6e
topology: v6e:2x2x1
jax: 0.10.0
libtpu: 0.0.40
codegen_flags: <defaults>
</compile_context>

<pallas_src>
import jax
import jax.numpy as jnp
from jax.experimental import pallas as pl
from jax.experimental.pallas import tpu as pltpu

# Static sizes implied by the module.
L_IN = 16
K = 5
C1 = 20
C2 = 50
L_CONV1 = L_IN - K + 1          # 12
L_POOL1 = L_CONV1 // 2          # 6
L_CONV2 = L_POOL1 - K + 1       # 2
FC1_OUT = 10
FC2_OUT = (18 * 2 + 1) * (19 * 2 + 1)      # 1443
FC2_PAD = 12 * 128                          # 1536 lane-dense padded logits
LANE = 128
SLAB = L_POOL1 * C1                         # 120 real slab lanes
NEG_BIG = -1e30                 # padded-logit bias (f32 only!): exp -> exactly 0

TN_MAX = 1024                               # batch tile cap
VMEM_LIMIT = 32 * 1024 * 1024               # explicit scoped VMEM (fits all chips)


def _round_up(x, m):
    return ((x + m - 1) // m) * m


# ---------------------------------------------------------------------------
# Kernel
# ---------------------------------------------------------------------------
def _cnn_kernel(x_ref, w1f_ref, b1f_ref, w2f_ref, b2f_ref,
                fw1_ref, fb1_ref, fw2_ref, fb2_ref, out_ref):
    # x_ref  : (TN, 16)
    # w1f_ref: (16, 256)  fused conv1 Toeplitz (lanes 0..127 even, 128..255 odd)
    # b1f_ref: (1, 128)   tiled conv1 bias (lanes 120..127 zero)
    # w2f_ref: (128, 256) fused conv2 weights (t=0 | t=1), rows 120..127 zero
    # b2f_ref: (1, 128)   conv2 bias (lanes 50..127 zero)
    # fw1_ref: (128, 10)  fc1 weight, rows 50..127 zero ; fb1_ref: (1, 10)
    # fw2_ref: (10, 1536) fc2 weight, cols 1443..1535 zero
    # fb2_ref: (1, 1536)  fc2 bias, cols 1443..1535 = NEG_BIG
    # out_ref: (TN, 1443)
    x = x_ref[...]

    # conv1 (even|odd fused Toeplitz) -> maxpool1 -> +bias -> ReLU  : (TN, 128)
    y = jnp.dot(x, w1f_ref[...], preferred_element_type=jnp.float32)
    slab = jnp.maximum(jnp.maximum(y[:, :LANE], y[:, LANE:]) + b1f_ref[...], 0.0)

    # conv2 (t=0|t=1 fused) -> maxpool2 -> +bias -> ReLU            : (TN, 128)
    z = jnp.dot(slab, w2f_ref[...], preferred_element_type=jnp.float32)
    feat = jnp.maximum(jnp.maximum(z[:, :LANE], z[:, LANE:]) + b2f_ref[...], 0.0)

    # fc1 + ReLU                                                    : (TN, 10)
    h = jnp.dot(feat, fw1_ref[...], preferred_element_type=jnp.float32)
    h = jnp.maximum(h + fb1_ref[...], 0.0)

    # fc2 (lane-padded to 1536; padded lanes carry NEG_BIG bias)    : (TN, 1536)
    logits = jnp.dot(h, fw2_ref[...], preferred_element_type=jnp.float32)
    logits = logits + fb2_ref[...]

    # softmax over the feature axis (padded lanes -> exp == 0)
    m = jnp.max(logits, axis=-1, keepdims=True)
    e = jnp.exp(logits - m)
    s = jnp.sum(e, axis=-1, keepdims=True)
    inv = 1.0 / s                       # exact narrow reciprocal: rows sum to 1
    out_ref[...] = ((e * inv)[:, :FC2_OUT]).astype(out_ref.dtype)


# ---------------------------------------------------------------------------
# One-time parameter prepack (hoisted out of the forward path)
# ---------------------------------------------------------------------------
def prepack_params(params):
    f32 = jnp.float32
    w1 = params["conv1_w"].astype(f32)          # (C1, 1, K)
    b1 = params["conv1_b"].astype(f32)          # (C1,)
    w2 = params["conv2_w"].astype(f32)          # (C2, C1, K)
    b2 = params["conv2_b"].astype(f32)          # (C2,)

    # Fused conv1 Toeplitz: slab lane j = 20*p + c <-> pooled position p, chan c.
    wkc = jnp.transpose(w1[:, 0, :], (1, 0))                 # (K, C1), [k, c]
    w1f = jnp.zeros((L_IN, 2 * LANE), f32)
    for p in range(L_POOL1):
        te, to = 2 * p, 2 * p + 1
        w1f = w1f.at[te:te + K, p * C1:(p + 1) * C1].set(wkc)                 # even
        w1f = w1f.at[to:to + K, LANE + p * C1:LANE + (p + 1) * C1].set(wkc)   # odd
    b1f = jnp.zeros((1, LANE), f32).at[0, :SLAB].set(jnp.tile(b1, L_POOL1))

    # Fused conv2: rows = slab lanes (k*C1 + c1 shifted by timestep), cols t0|t1.
    w2m = jnp.transpose(w2, (2, 1, 0)).reshape(K * C1, C2)   # rows k*C1 + c1
    w2f = jnp.zeros((LANE, 2 * LANE), f32)
    w2f = w2f.at[0:K * C1, 0:C2].set(w2m)                    # t = 0: p = 0..4
    w2f = w2f.at[C1:C1 + K * C1, LANE:LANE + C2].set(w2m)    # t = 1: p = 1..5
    b2f = jnp.zeros((1, LANE), f32).at[0, :C2].set(b2)

    # fc1: rows padded 50 -> 128 so the padded feat lanes contribute nothing.
    fw1 = jnp.zeros((LANE, FC1_OUT), f32).at[:C2, :].set(
        jnp.transpose(params["fc1_w"].astype(f32), (1, 0)))
    fb1 = params["fc1_b"].astype(f32).reshape(1, FC1_OUT)

    # fc2: lane-pad 1443 -> 1536. Padded weight cols = 0, padded bias = NEG_BIG.
    fw2 = jnp.zeros((FC1_OUT, FC2_PAD), f32).at[:, :FC2_OUT].set(
        jnp.transpose(params["fc2_w"].astype(f32), (1, 0)))
    fb2 = jnp.full((1, FC2_PAD), NEG_BIG, f32).at[0, :FC2_OUT].set(
        params["fc2_b"].astype(f32))

    return (w1f, b1f, w2f, b2f, fw1, fb1, fw2, fb2)


# ---------------------------------------------------------------------------
# Forward wrapper
# ---------------------------------------------------------------------------
def cnn_state_selector(x, packed, tn_max=TN_MAX, out_dtype=jnp.float32):
    """x: (N, 1, 16) float32 (PyTorch NCL). Returns (N, 1443) softmax probs.

    out_dtype=jnp.bfloat16 halves the dominant HBM writeback if consumers
    accept bf16 probabilities (max/sum/reciprocal stay f32 in-kernel).
    """
    n, c, l = x.shape
    assert c == 1 and l == L_IN, "this model requires (N, 1, 16) input"
    x2 = x.reshape(n, L_IN).astype(jnp.float32)

    # Tile selection: sublane-aligned, >=2 grid steps when N > 8 (v7x 2-TC),
    # minimal batch padding, tile capped at tn_max.
    n8 = _round_up(max(n, 8), 8)
    if n8 <= 8:
        tn, n_pad = 8, 8
    else:
        n_steps = max(2, pl.cdiv(n8, tn_max))
        tn = _round_up(pl.cdiv(n8, n_steps), 8)
        n_pad = _round_up(n8, tn)
    if n_pad != n:
        x2 = jnp.pad(x2, ((0, n_pad - n), (0, 0)))

    # Weights: full-array blocks, constant index_map -> VMEM-resident.
    weight_specs = [pl.BlockSpec(p.shape, lambda i: (0, 0)) for p in packed]

    flops = 2 * n_pad * (L_IN * 2 * LANE + LANE * 2 * LANE
                         + LANE * FC1_OUT + FC1_OUT * FC2_PAD)
    bytes_out = n_pad * FC2_OUT * jnp.dtype(out_dtype).itemsize
    bytes_accessed = (n_pad * L_IN * 4 + bytes_out
                      + sum(int(p.size) * 4 for p in packed))
    cost = pl.CostEstimate(flops=flops, transcendentals=n_pad * FC2_PAD,
                           bytes_accessed=bytes_accessed)

    out = pl.pallas_call(
        _cnn_kernel,
        out_shape=jax.ShapeDtypeStruct((n_pad, FC2_OUT), out_dtype),
        grid_spec=pltpu.PrefetchScalarGridSpec(
            num_scalar_prefetch=0,
            grid=(n_pad // tn,),
            in_specs=[pl.BlockSpec((tn, L_IN), lambda i: (i, 0))] + weight_specs,
            out_specs=pl.BlockSpec((tn, FC2_OUT), lambda i: (i, 0)),
        ),
        compiler_params=pltpu.CompilerParams(
            dimension_semantics=("parallel",),
            vmem_limit_bytes=VMEM_LIMIT),
        cost_estimate=cost,
    )(x2, *packed)

    return out[:n] if n_pad != n else out


# ---------------------------------------------------------------------------
# Parameter init + plain-JAX reference
# ---------------------------------------------------------------------------
def init_params(key):
    ks = jax.random.split(key, 8)

    def u(k, shape, fan_in):
        bound = 1.0 / (fan_in ** 0.5)
        return jax.random.uniform(k, shape, jnp.float32, -bound, bound)

    return {
        "conv1_w": u(ks[0], (C1, 1, K), 1 * K),
        "conv1_b": u(ks[1], (C1,), 1 * K),
        "conv2_w": u(ks[2], (C2, C1, K), C1 * K),
        "conv2_b": u(ks[3], (C2,), C1 * K),
        "fc1_w": u(ks[4], (FC1_OUT, C2), C2),
        "fc1_b": u(ks[5], (FC1_OUT,), C2),
        "fc2_w": u(ks[6], (FC2_OUT, FC1_OUT), FC1_OUT),
        "fc2_b": u(ks[7], (FC2_OUT,), FC1_OUT),
    }


def reference_forward(x, params):
    """Plain-JAX reference of the same math (runs through XLA, not Mosaic)."""
    n = x.shape[0]
    xs = x.reshape(n, L_IN)
    w1m = jnp.transpose(params["conv1_w"][:, 0, :], (1, 0))
    out1 = jnp.stack(
        [jnp.maximum(xs[:, t:t + K] @ w1m + params["conv1_b"], 0.0)
         for t in range(L_CONV1)], axis=1)                          # (N, 12, C1)
    pooled1 = jnp.maximum(out1[:, 0::2, :], out1[:, 1::2, :])       # (N, 6, C1)
    w2m = jnp.transpose(params["conv2_w"], (2, 1, 0))               # (K, C1, C2)
    out2 = []
    for t in range(L_CONV2):
        acc = params["conv2_b"][None, :]
        for k in range(K):
            acc = acc + pooled1[:, t + k, :] @ w2m[k]
        out2.append(jnp.maximum(acc, 0.0))
    feat = jnp.maximum(out2[0], out2[1])                            # (N, C2)
    h = jnp.maximum(feat @ params["fc1_w"].T + params["fc1_b"], 0.0)
    logits = h @ params["fc2_w"].T + params["fc2_b"]
    return jax.nn.softmax(logits, axis=-1)


if __name__ == "__main__":
    key = jax.random.PRNGKey(0)
    k_x, k_p = jax.random.split(key)
    x = jax.random.normal(k_x, (2, 1, L_IN), dtype=jnp.float32)
    params = init_params(k_p)

    packed = prepack_params(params)                 # one-time prepack
    packed = jax.tree_util.tree_map(jax.block_until_ready, packed)

    out = cnn_state_selector(x, packed)
    out = jax.block_until_ready(out)

    ref = jax.block_until_ready(reference_forward(x, params))
    assert out.shape == (2, FC2_OUT)
    # Exact normalization now: rows sum to 1 to f32 precision.
    assert jnp.allclose(jnp.sum(out, axis=-1), 1.0, atol=1e-4)
    assert jnp.allclose(out, ref, rtol=2e-3, atol=2e-6)

    print("KERNEL_OK")
</pallas_src>

<mosaic_0001>
module attributes {stable_mosaic.version = 11 : i64} {
  func.func @_cnn_kernel(%arg0: i32, %arg1: memref<8x16xf32, #tpu.memory_space<vmem>>, %arg2: memref<16x256xf32, #tpu.memory_space<vmem>>, %arg3: memref<1x128xf32, #tpu.memory_space<vmem>>, %arg4: memref<128x256xf32, #tpu.memory_space<vmem>>, %arg5: memref<1x128xf32, #tpu.memory_space<vmem>>, %arg6: memref<128x10xf32, #tpu.memory_space<vmem>>, %arg7: memref<1x10xf32, #tpu.memory_space<vmem>>, %arg8: memref<10x1536xf32, #tpu.memory_space<vmem>>, %arg9: memref<1x1536xf32, #tpu.memory_space<vmem>>, %arg10: memref<8x1443xf32, #tpu.memory_space<vmem>>) attributes {dimension_semantics = [#tpu.dimension_semantics<parallel>], iteration_bounds = array<i64: 1>, scalar_prefetch = 0 : i64, scratch_operands = 0 : i64, tpu.core_type = #tpu.core_type<tc>, window_params = [{transform_indices = @transform_0, window_bounds = array<i64: 8, 16>}, {pipeline_mode = #tpu.pipeline_mode<synchronous>, transform_indices = @transform_1, window_bounds = array<i64: 16, 256>}, {pipeline_mode = #tpu.pipeline_mode<synchronous>, transform_indices = @transform_2, window_bounds = array<i64: 1, 128>}, {pipeline_mode = #tpu.pipeline_mode<synchronous>, transform_indices = @transform_3, window_bounds = array<i64: 128, 256>}, {pipeline_mode = #tpu.pipeline_mode<synchronous>, transform_indices = @transform_4, window_bounds = array<i64: 1, 128>}, {pipeline_mode = #tpu.pipeline_mode<synchronous>, transform_indices = @transform_5, window_bounds = array<i64: 128, 10>}, {pipeline_mode = #tpu.pipeline_mode<synchronous>, transform_indices = @transform_6, window_bounds = array<i64: 1, 10>}, {pipeline_mode = #tpu.pipeline_mode<synchronous>, transform_indices = @transform_7, window_bounds = array<i64: 10, 1536>}, {pipeline_mode = #tpu.pipeline_mode<synchronous>, transform_indices = @transform_8, window_bounds = array<i64: 1, 1536>}, {transform_indices = @transform_9, window_bounds = array<i64: 8, 1443>}]} {
    %c0 = arith.constant 0 : index
    %c0_0 = arith.constant 0 : index
    %0 = vector.load %arg1[%c0, %c0_0] : memref<8x16xf32, #tpu.memory_space<vmem>>, vector<8x16xf32>
    %c0_1 = arith.constant 0 : index
    %c0_2 = arith.constant 0 : index
    %1 = vector.load %arg2[%c0_1, %c0_2] : memref<16x256xf32, #tpu.memory_space<vmem>>, vector<16x256xf32>
    %cst = arith.constant dense<0.000000e+00> : vector<8x256xf32>
    %2 = tpu.matmul %0, %1, %cst {dimension_numbers = #tpu.dot_dimension_numbers<[1], [0], [0], [1], [0, 0, 1, 1], [], []>} : vector<8x16xf32>, vector<16x256xf32>, vector<8x256xf32> -> vector<8x256xf32>
    %3 = vector.extract_strided_slice %2 {offsets = [0, 0], sizes = [8, 128], strides = [1, 1]} : vector<8x256xf32> to vector<8x128xf32>
    %4 = vector.extract_strided_slice %2 {offsets = [0, 128], sizes = [8, 128], strides = [1, 1]} : vector<8x256xf32> to vector<8x128xf32>
    %5 = arith.maximumf %3, %4 : vector<8x128xf32>
    %c0_3 = arith.constant 0 : index
    %c0_4 = arith.constant 0 : index
    %6 = vector.load %arg3[%c0_3, %c0_4] : memref<1x128xf32, #tpu.memory_space<vmem>>, vector<1x128xf32>
    %7 = vector.broadcast %6 : vector<1x128xf32> to vector<8x128xf32>
    %8 = arith.addf %5, %7 : vector<8x128xf32>
    %cst_5 = arith.constant 0.000000e+00 : f32
    %9 = vector.broadcast %cst_5 : f32 to vector<8x128xf32>
    %10 = arith.maximumf %8, %9 : vector<8x128xf32>
    %c0_6 = arith.constant 0 : index
    %c0_7 = arith.constant 0 : index
    %11 = vector.load %arg4[%c0_6, %c0_7] : memref<128x256xf32, #tpu.memory_space<vmem>>, vector<128x256xf32>
    %cst_8 = arith.constant dense<0.000000e+00> : vector<8x256xf32>
    %12 = tpu.matmul %10, %11, %cst_8 {dimension_numbers = #tpu.dot_dimension_numbers<[1], [0], [0], [1], [0, 0, 1, 1], [], []>} : vector<8x128xf32>, vector<128x256xf32>, vector<8x256xf32> -> vector<8x256xf32>
    %13 = vector.extract_strided_slice %12 {offsets = [0, 0], sizes = [8, 128], strides = [1, 1]} : vector<8x256xf32> to vector<8x128xf32>
    %14 = vector.extract_strided_slice %12 {offsets = [0, 128], sizes = [8, 128], strides = [1, 1]} : vector<8x256xf32> to vector<8x128xf32>
    %15 = arith.maximumf %13, %14 : vector<8x128xf32>
    %c0_9 = arith.constant 0 : index
    %c0_10 = arith.constant 0 : index
    %16 = vector.load %arg5[%c0_9, %c0_10] : memref<1x128xf32, #tpu.memory_space<vmem>>, vector<1x128xf32>
    %17 = vector.broadcast %16 : vector<1x128xf32> to vector<8x128xf32>
    %18 = arith.addf %15, %17 : vector<8x128xf32>
    %cst_11 = arith.constant 0.000000e+00 : f32
    %19 = vector.broadcast %cst_11 : f32 to vector<8x128xf32>
    %20 = arith.maximumf %18, %19 : vector<8x128xf32>
    %c0_12 = arith.constant 0 : index
    %c0_13 = arith.constant 0 : index
    %21 = vector.load %arg6[%c0_12, %c0_13] : memref<128x10xf32, #tpu.memory_space<vmem>>, vector<128x10xf32>
    %cst_14 = arith.constant dense<0.000000e+00> : vector<8x10xf32>
    %22 = tpu.matmul %20, %21, %cst_14 {dimension_numbers = #tpu.dot_dimension_numbers<[1], [0], [0], [1], [0, 0, 1, 1], [], []>} : vector<8x128xf32>, vector<128x10xf32>, vector<8x10xf32> -> vector<8x10xf32>
    %c0_15 = arith.constant 0 : index
    %c0_16 = arith.constant 0 : index
    %23 = vector.load %arg7[%c0_15, %c0_16] : memref<1x10xf32, #tpu.memory_space<vmem>>, vector<1x10xf32>
    %24 = vector.broadcast %23 : vector<1x10xf32> to vector<8x10xf32>
    %25 = arith.addf %22, %24 : vector<8x10xf32>
    %cst_17 = arith.constant 0.000000e+00 : f32
    %26 = vector.broadcast %cst_17 : f32 to vector<8x10xf32>
    %27 = arith.maximumf %25, %26 : vector<8x10xf32>
    %c0_18 = arith.constant 0 : index
    %c0_19 = arith.constant 0 : index
    %28 = vector.load %arg8[%c0_18, %c0_19] : memref<10x1536xf32, #tpu.memory_space<vmem>>, vector<10x1536xf32>
    %cst_20 = arith.constant dense<0.000000e+00> : vector<8x1536xf32>
    %29 = tpu.matmul %27, %28, %cst_20 {dimension_numbers = #tpu.dot_dimension_numbers<[1], [0], [0], [1], [0, 0, 1, 1], [], []>} : vector<8x10xf32>, vector<10x1536xf32>, vector<8x1536xf32> -> vector<8x1536xf32>
    %c0_21 = arith.constant 0 : index
    %c0_22 = arith.constant 0 : index
    %30 = vector.load %arg9[%c0_21, %c0_22] : memref<1x1536xf32, #tpu.memory_space<vmem>>, vector<1x1536xf32>
    %31 = vector.broadcast %30 : vector<1x1536xf32> to vector<8x1536xf32>
    %32 = arith.addf %29, %31 : vector<8x1536xf32>
    %cst_23 = arith.constant dense<0xFF800000> : vector<8xf32>
    %33 = vector.multi_reduction <maximumf>, %32, %cst_23 [1] : vector<8x1536xf32> to vector<8xf32>
    %34 = vector.shape_cast %33 : vector<8xf32> to vector<8x1xf32>
    %35 = vector.broadcast %34 : vector<8x1xf32> to vector<8x1536xf32>
    %36 = arith.subf %32, %35 : vector<8x1536xf32>
    %37 = math.exp %36 : vector<8x1536xf32>
    %cst_24 = arith.constant dense<0.000000e+00> : vector<8xf32>
    %38 = vector.multi_reduction <add>, %37, %cst_24 [1] : vector<8x1536xf32> to vector<8xf32>
    %39 = vector.shape_cast %38 : vector<8xf32> to vector<8x1xf32>
    %cst_25 = arith.constant 1.000000e+00 : f32
    %40 = vector.broadcast %cst_25 : f32 to vector<8x1xf32>
    %41 = arith.divf %40, %39 : vector<8x1xf32>
    %42 = vector.broadcast %41 : vector<8x1xf32> to vector<8x1536xf32>
    %43 = arith.mulf %37, %42 : vector<8x1536xf32>
    %44 = vector.extract_strided_slice %43 {offsets = [0, 0], sizes = [8, 1443], strides = [1, 1]} : vector<8x1536xf32> to vector<8x1443xf32>
    %c0_26 = arith.constant 0 : index
    %c0_27 = arith.constant 0 : index
    %45 = vector.load %arg10[%c0_26, %c0_27] : memref<8x1443xf32, #tpu.memory_space<vmem>>, vector<8x1443xf32>
    tpu.vector_store %arg10[%c0_26, %c0_27], %44 {strides = array<i32>} : memref<8x1443xf32, #tpu.memory_space<vmem>>, vector<8x1443xf32>,
    return
  }
  func.func @transform_0(%arg0: i32) -> (i32, i32) {
    %c0_i32 = arith.constant 0 : i32
    %c0_i32_0 = arith.constant 0 : i32
    return %arg0, %c0_i32 : i32, i32
  }
  func.func @transform_1(%arg0: i32) -> (i32, i32) {
    %c0_i32 = arith.constant 0 : i32
    %c0_i32_0 = arith.constant 0 : i32
    %c0_i32_1 = arith.constant 0 : i32
    return %c0_i32, %c0_i32_0 : i32, i32
  }
  func.func @transform_2(%arg0: i32) -> (i32, i32) {
    %c0_i32 = arith.constant 0 : i32
    %c0_i32_0 = arith.constant 0 : i32
    %c0_i32_1 = arith.constant 0 : i32
    return %c0_i32, %c0_i32_0 : i32, i32
  }
  func.func @transform_3(%arg0: i32) -> (i32, i32) {
    %c0_i32 = arith.constant 0 : i32
    %c0_i32_0 = arith.constant 0 : i32
    %c0_i32_1 = arith.constant 0 : i32
    return %c0_i32, %c0_i32_0 : i32, i32
  }
  func.func @transform_4(%arg0: i32) -> (i32, i32) {
    %c0_i32 = arith.constant 0 : i32
    %c0_i32_0 = arith.constant 0 : i32
    %c0_i32_1 = arith.constant 0 : i32
    return %c0_i32, %c0_i32_0 : i32, i32
  }
  func.func @transform_5(%arg0: i32) -> (i32, i32) {
    %c0_i32 = arith.constant 0 : i32
    %c0_i32_0 = arith.constant 0 : i32
    %c0_i32_1 = arith.constant 0 : i32
    return %c0_i32, %c0_i32_0 : i32, i32
  }
  func.func @transform_6(%arg0: i32) -> (i32, i32) {
    %c0_i32 = arith.constant 0 : i32
    %c0_i32_0 = arith.constant 0 : i32
    %c0_i32_1 = arith.constant 0 : i32
    return %c0_i32, %c0_i32_0 : i32, i32
  }
  func.func @transform_7(%arg0: i32) -> (i32, i32) {
    %c0_i32 = arith.constant 0 : i32
    %c0_i32_0 = arith.constant 0 : i32
    %c0_i32_1 = arith.constant 0 : i32
    return %c0_i32, %c0_i32_0 : i32, i32
  }
  func.func @transform_8(%arg0: i32) -> (i32, i32) {
    %c0_i32 = arith.constant 0 : i32
    %c0_i32_0 = arith.constant 0 : i32
    %c0_i32_1 = arith.constant 0 : i32
    return %c0_i32, %c0_i32_0 : i32, i32
  }
  func.func @transform_9(%arg0: i32) -> (i32, i32) {
    %c0_i32 = arith.constant 0 : i32
    %c0_i32_0 = arith.constant 0 : i32
    return %arg0, %c0_i32 : i32, i32
  }
}

</mosaic_0001>

<bundles_post_ra>
// kernel: tpu_custom_call.1
= control target key start
LH: loop header
LB: loop body
LE: loop exit
PB: predicated region body
PF: predicated region fallthrough
CT: control target
= control target key end

     0   :  { %14 = vsyncpa [#allocation3], 0  ;;  %s1383_s0 = inlined_call_operand.vmem [shape: f32[8,16], index: 0, kind: input, shape index: {}]   ;;  %s1384_s1 = inlined_call_operand.vmem [shape: f32[16,256], index: 1, kind: input, shape index: {}]   ;;  %s1385_s2 = inlined_call_operand.vmem [shape: f32[1,128], index: 2, kind: input, shape index: {}]   ;;  %s1386_s3 = inlined_call_operand.hbm [shape: f32[128,256], index: 3, kind: input, shape index: {}]   ;;  %s1387_s4 = inlined_call_operand.vmem [shape: f32[1,128], index: 4, kind: input, shape index: {}]   ;;  %s1388_s5 = inlined_call_operand.vmem [shape: f32[128,10], index: 5, kind: input, shape index: {}]   ;;  %s1389_s6 = inlined_call_operand.vmem [shape: f32[1,10], index: 6, kind: input, shape index: {}]   ;;  %s1390_s7 = inlined_call_operand.hbm [shape: f32[10,1536], index: 7, kind: input, shape index: {}]   ;;  %s1391_s8 = inlined_call_operand.vmem [shape: f32[1,1536], index: 8, kind: input, shape index: {}]   ;;  %s1392_s9 = inlined_call_operand.hbm [shape: f32[8,1443], index: 9, kind: output, shape index: {}]  }
   0x1   :  { %15 = vsyncpa [#allocation6], 0 }
   0x2   :  { %16 = vsyncpa [#allocation4], 0  ;;  %s1193_s30 = smov [#allocation2]  }
   0x3   :  { %s28_s10 = sshll.u32 %s1193_s30, 4  ;;  %s29_s10 = int_to_ptr.vmem [resolvable:$true] %s28_s10 }
   0x4   :  { %s1135_s11 = scalar_lea.vmem %s29_s10, 4096  ;;  %p1140_p1 = scmp.lt.s32.totalorder %s29_s10, %s29_s10 }
   0x5   :  { %p1136_p0 = scmp.ne.s32.totalorder %s29_s10, %s1135_s11  ;;  %p1141_p2 = scmp.lt.s32.totalorder %s1135_s11, %s1135_s11 }
   0x7   :  { %p1142_p3 = por %p1141_p2, %p1140_p1 }
   0x9   :  { %p1143_p4 = pnand %p1142_p3, %p1136_p0 }
   0xb   :  { %1146 = shalt.err (!%p1143_p4)
}
   0xc   :  { %s1194_s12 = smov 256   ;;  %s1195_s13 = smov 16  }
   0xd   :  { %34 = dma.hbm_to_vmem [thread:$0]  %s1386_s3, 4096, %s29_s10, [#allocation3], %s1194_s12, %s1194_s12, %s1195_s13  }
   0xe   :  { %s1196_s16 = smov [#allocation5]  }
   0xf   :  { %s46_s17 = sshll.u32 %s1196_s16, 4  ;;  %s47_s17 = int_to_ptr.vmem [resolvable:$true] %s46_s17 }
  0x10   :  { %s1155_s18 = scalar_lea.vmem %s47_s17, 3072  ;;  %p1160_p6 = scmp.lt.s32.totalorder %s47_s17, %s47_s17 }
  0x11   :  { %p1156_p5 = scmp.ne.s32.totalorder %s47_s17, %s1155_s18  ;;  %p1161_p7 = scmp.lt.s32.totalorder %s1155_s18, %s1155_s18 }
  0x13   :  { %p1162_p8 = por %p1161_p7, %p1160_p6 }
  0x15   :  { %p1163_p9 = pnand %p1162_p8, %p1156_p5 }
  0x17   :  { %1166 = shalt.err (!%p1163_p9)
}
  0x18   :  { %s1197_s19 = smov 1536   ;;  %s1198_s20 = smov 96  }
  0x19   :  { %52 = dma.hbm_to_vmem [thread:$0]  %s1390_s7, 3072, %s47_s17, [#allocation6], %s1197_s19, %s1197_s19, %s1198_s20  }
  0x1a   :  { %1187 = dma.done.wait [#allocation3], 4096  }
  0x1b   :  { %1188 = vsyncadd [#allocation3], 4294963200 }
  0x1c   :  { %1189 = dma.done.wait [#allocation6], 3072  }
  0x1d   :  { %1190 = vsyncadd [#allocation6], 4294964224  ;;  %v1199_v0 = vmov 0.0   ;;  %v65_v1 = vld [vmem:[%s1384_s1 + $0x18] sm:$0xff]  ;;  %v64_v2 = vld [vmem:[%s1384_s1 + $0x10] sm:$0xff]  ;;  %vm66_vm0 = vcmask 130048  }
  0x1e   :  { %134 = vmatprep.mubr.f32.mxu0 %v1199_v0  ;;  %247 = vmatprep.mubr.f32.mxu1 %v1199_v0  ;;  %v63_v3 = vld [vmem:[%s1384_s1 + $0x8] sm:$0xff]  ;;  %v62_v4 = vld [vmem:[%s1384_s1] sm:$0xff]  ;;  %v182_v6 = vld [vmem:[#allocation2 + $0xf8] sm:$0xff]  ;;  %vm1200_vm1 = vmmov 0   ;;  %vm450_vm2 = vcmask 1041408   ;;  %vm446_vm3 = vcmask 80896  }
  0x1f   :  { %98 = vmatprep.subr.mxu0 %v65_v1  ;;  %v61_v5 = vld [vmem:[%s1383_s0] sm:$0xff]  ;;  %183 = vmatprep.subr.mxu1 %v182_v6  ;;  %v181_v7 = vld [vmem:[#allocation2 + $0xf0] sm:$0xff]  ;;  %v180_v8 = vld [vmem:[#allocation2 + $0xe8] sm:$0xff]  ;;  %vm1000_vm4 = vcmask 285696  }
  0x20   :  { %99 = vmatpush1.msra.mxu0 %v64_v2  ;;  %v179_v9 = vld [vmem:[#allocation2 + $0xe0] sm:$0xff]  ;;  %184 = vmatpush1.msra.mxu1 %v181_v7  ;;  %v178_v10 = vld [vmem:[#allocation2 + $0xd8] sm:$0xff]  ;;  %v177_v11 = vld [vmem:[#allocation2 + $0xd0] sm:$0xff] }
  0x21   :  { %100 = vmatprep.subr.mxu0 %v63_v3  ;;  %185 = vmatprep.subr.mxu1 %v180_v8  ;;  %v176_v12 = vld [vmem:[#allocation2 + $0xc8] sm:$0xff]  ;;  %v175_v13 = vld [vmem:[#allocation2 + $0xc0] sm:$0xff]  ;;  %v174_v14 = vld [vmem:[#allocation2 + $0xb8] sm:$0xff] }
  0x22   :  { %101 = vmatpush1.msra.mxu0 %v62_v4  ;;  %186 = vmatpush1.msra.mxu1 %v179_v9  ;;  %v173_v15 = vld [vmem:[#allocation2 + $0xb0] sm:$0xff]  ;;  %v172_v16 = vld [vmem:[#allocation2 + $0xa8] sm:$0xff]  ;;  %v171_v17 = vld [vmem:[#allocation2 + $0xa0] sm:$0xff] }
  0x23   :  { %1018 = vmatmul.mubr.msk.f32.vlgmr.msra.gmra.mxu0 %vm66_vm0, %v61_v5  ;;  %187 = vmatprep.subr.mxu1 %v178_v10  ;;  %v170_v18 = vld [vmem:[#allocation2 + $0x98] sm:$0xff]  ;;  %v169_v19 = vld [vmem:[#allocation2 + $0x90] sm:$0xff]  ;;  %v168_v20 = vld [vmem:[#allocation2 + $0x88] sm:$0xff] }
  0x24   :  { %1057 = vmatprep.subr.mxu0 %v1199_v0  ;;  %188 = vmatpush1.msra.mxu1 %v177_v11  ;;  %v167_v21 = vld [vmem:[#allocation2 + $0x80] sm:$0xff]  ;;  %v166_v22 = vld [vmem:[#allocation2 + $0x78] sm:$0xff]  ;;  %v165_v23 = vld [vmem:[#allocation2 + $0x70] sm:$0xff] }
  0x25   :  { %189 = vmatprep.subr.mxu1 %v176_v12  ;;  %v164_v24 = vld [vmem:[#allocation2 + $0x68] sm:$0xff]  ;;  %v163_v25 = vld [vmem:[#allocation2 + $0x60] sm:$0xff]  ;;  %v162_v26 = vld [vmem:[#allocation2 + $0x58] sm:$0xff]  ;;  %1089 = vmatprep.mubr.msk.f32.mxu0 %vm1200_vm1, %v1199_v0 }
  0x26   :  { %190 = vmatpush1.msra.mxu1 %v175_v13  ;;  %v161_v27 = vld [vmem:[#allocation2 + $0x50] sm:$0xff]  ;;  %v160_v28 = vld [vmem:[#allocation2 + $0x48] sm:$0xff]  ;;  %v159_v29 = vld [vmem:[#allocation2 + $0x40] sm:$0xff] }
  0x27   :  { %191 = vmatprep.subr.mxu1 %v174_v14  ;;  %v158_v30 = vld [vmem:[#allocation2 + $0x38] sm:$0xff]  ;;  %v157_v31 = vld [vmem:[#allocation2 + $0x30] sm:$0xff]  ;;  %v156_v32 = vld [vmem:[#allocation2 + $0x28] sm:$0xff] }
  0x28   :  { %192 = vmatpush1.msra.mxu1 %v173_v15  ;;  %v155_v33 = vld [vmem:[#allocation2 + $0x20] sm:$0xff]  ;;  %v154_v34 = vld [vmem:[#allocation2 + $0x18] sm:$0xff]  ;;  %v153_v35 = vld [vmem:[#allocation2 + $0x10] sm:$0xff] }
  0x29   :  { %193 = vmatprep.subr.mxu1 %v172_v16  ;;  %v152_v36 = vld [vmem:[#allocation2 + $0x8] sm:$0xff]  ;;  %v151_v37 = vld [vmem:[#allocation2] sm:$0xff]  ;;  %v279_v38 = vld [vmem:[%s1388_s5 + $0x78] sm:$0xff] }
  0x2a   :  { %194 = vmatpush1.msra.mxu1 %v171_v17  ;;  %v278_v39 = vld [vmem:[%s1388_s5 + $0x70] sm:$0xff]  ;;  %1058 = vmatpush3.msra.mxu0 %v279_v38  ;;  %v277_v40 = vld [vmem:[%s1388_s5 + $0x68] sm:$0xff]  ;;  %v276_v41 = vld [vmem:[%s1388_s5 + $0x60] sm:$0xff] }
  0x2b   :  { %195 = vmatprep.subr.mxu1 %v170_v18  ;;  %1059 = vmatprep.subr.mxu0 %v1199_v0  ;;  %v275_v42 = vld [vmem:[%s1388_s5 + $0x58] sm:$0xff]  ;;  %v274_v43 = vld [vmem:[%s1388_s5 + $0x50] sm:$0xff]  ;;  %v273_v44 = vld [vmem:[%s1388_s5 + $0x48] sm:$0xff] }
  0x2c   :  { %196 = vmatpush1.msra.mxu1 %v169_v19  ;;  %1060 = vmatpush3.msra.mxu0 %v278_v39  ;;  %v272_v45 = vld [vmem:[%s1388_s5 + $0x40] sm:$0xff]  ;;  %v271_v46 = vld [vmem:[%s1388_s5 + $0x38] sm:$0xff]  ;;  %v270_v47 = vld [vmem:[%s1388_s5 + $0x30] sm:$0xff] }
  0x2d   :  { %197 = vmatprep.subr.mxu1 %v168_v20  ;;  %1061 = vmatprep.subr.mxu0 %v1199_v0  ;;  %v269_v48 = vld [vmem:[%s1388_s5 + $0x28] sm:$0xff]  ;;  %v1019_v51 = vld [vmem:[%s1385_s2] ss:$0 sm:$0xff]  ;;  %v267_v56 = vld [vmem:[%s1388_s5 + $0x18] sm:$0xff] }
  0x2e   :  { %198 = vmatpush1.msra.mxu1 %v167_v21  ;;  %1062 = vmatpush3.msra.mxu0 %v277_v40  ;;  %v268_v55 = vld [vmem:[%s1388_s5 + $0x20] sm:$0xff]  ;;  %v266_v57 = vld [vmem:[%s1388_s5 + $0x10] sm:$0xff]  ;;  %v265_v58 = vld [vmem:[%s1388_s5 + $0x8] sm:$0xff] }
  0x2f   :  { %199 = vmatprep.subr.mxu1 %v166_v22  ;;  %1063 = vmatprep.subr.mxu0 %v1199_v0  ;;  %v264_v59 = vld [vmem:[%s1388_s5] sm:$0xff]  ;;  %v371_v3 = vld [vmem:[#allocation5 + $0x68] sm:$0x3]  ;;  %v373_v4 = vld [vmem:[#allocation5 + $0x78] sm:$0x3] }
  0x30   :  { %200 = vmatpush1.msra.mxu1 %v165_v23  ;;  %1064 = vmatpush3.msra.mxu0 %v276_v41  ;;  %v1020_v62 = vld [vmem:[%s1387_s4] ss:$0 sm:$0xff]  ;;  %v372_v6 = vld [vmem:[#allocation5 + $0x70] sm:$0x3]  ;;  %v359_v7 = vld [vmem:[#allocation5 + $0x8] sm:$0xff] }
  0x31   :  { %201 = vmatprep.subr.mxu1 %v164_v24  ;;  %1065 = vmatprep.subr.mxu0 %v1199_v0  ;;  %v370_v5 = vld [vmem:[#allocation5 + $0x60] sm:$0x3]  ;;  %v361_v8 = vld [vmem:[#allocation5 + $0x18] sm:$0xff]  ;;  %v360_v10 = vld [vmem:[#allocation5 + $0x10] sm:$0xff] }
  0x32   :  { %202 = vmatpush1.msra.mxu1 %v163_v25  ;;  %1066 = vmatpush3.msra.mxu0 %v275_v42  ;;  %v358_v9 = vld [vmem:[#allocation5] sm:$0xff]  ;;  %v375_v11 = vld [vmem:[#allocation5 + $0x88] sm:$0x3]  ;;  %v377_v12 = vld [vmem:[#allocation5 + $0x98] sm:$0x3] }
  0x33   :  { %203 = vmatprep.subr.mxu1 %v162_v26  ;;  %1067 = vmatprep.subr.mxu0 %v1199_v0  ;;  %v1021_v13 = vld [vmem:[%s1389_s6] ss:$0 sm:$0xff]  ;;  %v376_v19 = vld [vmem:[#allocation5 + $0x90] sm:$0x3]  ;;  %v363_v20 = vld [vmem:[#allocation5 + $0x28] sm:$0xff] }
  0x34   :  { %204 = vmatpush1.msra.mxu1 %v161_v27  ;;  %1068 = vmatpush3.msra.mxu0 %v274_v43  ;;  %v374_v18 = vld [vmem:[#allocation5 + $0x80] sm:$0x3]  ;;  %v365_v21 = vld [vmem:[#allocation5 + $0x38] sm:$0xff]  ;;  %v364_v23 = vld [vmem:[#allocation5 + $0x30] sm:$0xff] }
  0x35   :  { %205 = vmatprep.subr.mxu1 %v160_v28  ;;  %1069 = vmatprep.subr.mxu0 %v1199_v0  ;;  %v362_v22 = vld [vmem:[#allocation5 + $0x20] sm:$0xff]  ;;  %v379_v24 = vld [vmem:[#allocation5 + $0xa8] sm:$0x3]  ;;  %v381_v25 = vld [vmem:[#allocation5 + $0xb8] sm:$0x3] }
  0x36   :  { %206 = vmatpush1.msra.mxu1 %v159_v29  ;;  %1070 = vmatpush3.msra.mxu0 %v273_v44  ;;  %v378_v26 = vld [vmem:[#allocation5 + $0xa0] sm:$0x3]  ;;  %v380_v27 = vld [vmem:[#allocation5 + $0xb0] sm:$0x3]  ;;  %v367_v28 = vld [vmem:[#allocation5 + $0x48] sm:$0xff] }
  0x37   :  { %207 = vmatprep.subr.mxu1 %v158_v30  ;;  %1071 = vmatprep.subr.mxu0 %v1199_v0  ;;  %v369_v29 = vld [vmem:[#allocation5 + $0x58] sm:$0xff]  ;;  %v366_v30 = vld [vmem:[#allocation5 + $0x40] sm:$0xff] }
  0x38   :  { %208 = vmatpush1.msra.mxu1 %v157_v31  ;;  %1072 = vmatpush3.msra.mxu0 %v272_v45  ;;  %v368_v31 = vld [vmem:[#allocation5 + $0x50] sm:$0xff] }
  0x39   :  { %209 = vmatprep.subr.mxu1 %v156_v32  ;;  %1073 = vmatprep.subr.mxu0 %v1199_v0  ;;  %v386_v32 = vlaneseq }
  0x3a   :  { %210 = vmatpush1.msra.mxu1 %v155_v33  ;;  %1074 = vmatpush3.msra.mxu0 %v271_v46 }
  0x3b   :  { %211 = vmatprep.subr.mxu1 %v154_v34  ;;  %1075 = vmatprep.subr.mxu0 %v1199_v0  ;;  %v387_v33 = vshrl.u32 %v386_v32, 7 }
  0x3c   :  { %212 = vmatpush1.msra.mxu1 %v153_v35  ;;  %1076 = vmatpush3.msra.mxu0 %v270_v47 }
  0x3d   :  { %213 = vmatprep.subr.mxu1 %v152_v36  ;;  %1077 = vmatprep.subr.mxu0 %v1199_v0  ;;  %v404_v36 = vsub.s32 4, %v387_v33  ;;  %v408_v40 = vsub.s32 5, %v387_v33  ;;  %v416_v41 = vsub.s32 7, %v387_v33  ;;  %v388_v42 = vsub.s32 0, %v387_v33 }
  0x3e   :  { %214 = vmatpush1.msra.mxu1 %v151_v37  ;;  %1078 = vmatpush3.msra.mxu0 %v269_v48  ;;  %v412_v37 = vsub.s32 6, %v387_v33  ;;  %v396_v43 = vsub.s32 2, %v387_v33  ;;  %v392_v44 = vsub.s32 1, %v387_v33  ;;  %v400_v45 = vsub.s32 3, %v387_v33  ;;  %v383_v48 = vld [vmem:[%s1391_s8 + $0x8] sm:$0xf] }
  0x3f   :  { %1079 = vmatprep.subr.mxu0 %v1199_v0  ;;  %1022 = vmatprep.subr.msk.mxu1 %vm450_vm2, %v371_v3 }
  0x40   :  { %1080 = vmatpush3.msra.mxu0 %v268_v55  ;;  %v433_v3 = vrot.slane %v383_v48, %v400_v45 }
  0x41   :  { %1081 = vmatprep.subr.mxu0 %v1199_v0 }
  0x42   :  { %1082 = vmatpush3.msra.mxu0 %v267_v56 }
  0x43   :  { %1083 = vmatprep.subr.mxu0 %v1199_v0 }
  0x44   :  { %1084 = vmatpush3.msra.mxu0 %v266_v57 }
  0x45   :  { %1085 = vmatprep.subr.mxu0 %v1199_v0 }
  0x46   :  { %1086 = vmatpush3.msra.mxu0 %v265_v58 }
  0x47   :  { %1087 = vmatprep.subr.mxu0 %v1199_v0 }
  0x48   :  { %1088 = vmatpush3.msra.mxu0 %v264_v59  ;;  %v421_v59 = vrot.slane %v383_v48, %v388_v42 }
  0x49   :  { %1025 = vmatprep.subr.msk.mxu0 %vm450_vm2, %v373_v4 }
  0xe3   :  { %v136_v49 = vpop.f32.mrf.mxu0 }
  0xe5   :  { %v138_v50 = vpop.f32.mrf.mxu0 }
  0xe6   :  { %v141_v52 = vmax.f32 %v136_v49, %v138_v50 }
  0xe8   :  { %v149_v53 = vadd.f32 %v1019_v51, %v141_v52 }
  0xea   :  { %v150_v54 = vmax.f32 %v149_v53, 0.0 }
  0xec   :  { %248 = vmatmul.mubr.f32.vlgmr.msra.gmra.mxu1 %v150_v54 }
  0xed   :  { %551 = vmatprep.mubr.f32.mxu1 %v1199_v0  ;;  %1023 = vmatpush1.msk.msra.mxu1 %vm450_vm2, %v370_v5 }
  0xee   :  { %517 = vmatprep.subr.mxu1 %v359_v7 }
  0xef   :  { %518 = vmatpush1.msra.mxu1 %v358_v9 }
  0xf0   :  { %1028 = vmatprep.subr.msk.mxu1 %vm450_vm2, %v375_v11 }
 0x1ac   :  { %v249_v60 = vpop.f32.mrf.mxu1 }
 0x1ae   :  { %v251_v61 = vpop.f32.mrf.mxu1 }
 0x1af   :  { %v254_v63 = vmax.f32 %v249_v60, %v251_v61  ;;  %v429_v60 = vrot.slane %v383_v48, %v396_v43 }
 0x1b1   :  { %v262_v1 = vadd.f32 %v1020_v62, %v254_v63 }
 0x1b3   :  { %v263_v2 = vmax.f32 %v262_v1, 0.0 }
 0x1b5   :  { %1090 = vmatmul.mubr.f32.vlgmr.msra.gmra.mxu0 %v263_v2  ;;  %v425_v2 = vrot.slane %v383_v48, %v392_v44 }
 0x1b6   :  { %622 = vmatprep.mubr.f32.mxu0 %v1199_v0  ;;  %1026 = vmatpush1.msk.msra.mxu0 %vm450_vm2, %v372_v6 }
 0x1b7   :  { %588 = vmatprep.subr.mxu0 %v361_v8 }
 0x1b8   :  { %589 = vmatpush1.msra.mxu0 %v360_v10 }
 0x1b9   :  { %1031 = vmatprep.subr.msk.mxu0 %vm450_vm2, %v377_v12 }
 0x275   :  { %v353_v14 = vpop.f32.mrf.mxu0 }
 0x276   :  { %v354_v15 = vadd.f32 %v1021_v13, %v353_v14 }
 0x277   :  { %v1091_v16 = vpop.f32.mrf.mxu0 }
 0x278   :  { %v357_v17 = vmax.f32 %v354_v15, 0.0 }
 0x27a   :  { %1024 = vmatmul.mubr.msk.f32.vlgmr.msra.gmra.mxu1 %vm446_vm3, %v357_v17  ;;  %1027 = vmatmul.mubr.msk.f32.vlgmr.msra.gmra.mxu0 %vm446_vm3, %v357_v17 }
 0x27b   :  { %1029 = vmatpush1.msk.msra.mxu1 %vm450_vm2, %v374_v18  ;;  %1032 = vmatpush1.msk.msra.mxu0 %vm450_vm2, %v376_v19 }
 0x27c   :  { %659 = vmatprep.subr.mxu1 %v363_v20  ;;  %730 = vmatprep.subr.mxu0 %v365_v21 }
 0x27d   :  { %660 = vmatpush1.msra.mxu1 %v362_v22  ;;  %731 = vmatpush1.msra.mxu0 %v364_v23 }
 0x27e   :  { %693 = vmatprep.mubr.f32.mxu1 %v1199_v0  ;;  %764 = vmatprep.mubr.f32.mxu0 %v1199_v0 }
 0x27f   :  { %1034 = vmatprep.subr.msk.mxu1 %vm450_vm2, %v379_v24  ;;  %1037 = vmatprep.subr.msk.mxu0 %vm450_vm2, %v381_v25 }
 0x280   :  { %1030 = vmatmul.mubr.msk.f32.vlgmr.msra.gmra.mxu1 %vm446_vm3, %v357_v17  ;;  %1033 = vmatmul.mubr.msk.f32.vlgmr.msra.gmra.mxu0 %vm446_vm3, %v357_v17 }
 0x281   :  { %1035 = vmatpush1.msk.msra.mxu1 %vm450_vm2, %v378_v26  ;;  %1038 = vmatpush1.msk.msra.mxu0 %vm450_vm2, %v380_v27 }
 0x282   :  { %801 = vmatprep.subr.mxu1 %v367_v28  ;;  %872 = vmatprep.subr.mxu0 %v369_v29 }
 0x283   :  { %802 = vmatpush1.msra.mxu1 %v366_v30  ;;  %873 = vmatpush1.msra.mxu0 %v368_v31 }
 0x284   :  { %835 = vmatprep.mubr.f32.mxu1 %v1199_v0  ;;  %906 = vmatprep.mubr.f32.mxu0 %v1199_v0  ;;  %v382_v0 = vld [vmem:[%s1391_s8] sm:$0xff]  ;;  %s1201_s8 = smov [#allocation7]  }
 0x285   :  { %1036 = vmatmul.mubr.msk.f32.vlgmr.msra.gmra.mxu1 %vm446_vm3, %v357_v17  ;;  %1039 = vmatmul.mubr.msk.f32.vlgmr.msra.gmra.mxu0 %vm446_vm3, %v357_v17  ;;  %v405_v46 = vrot.slane %v382_v0, %v404_v36  ;;  %v413_v47 = vrot.slane %v382_v0, %v412_v37  ;;  %v409_v51 = vrot.slane %v382_v0, %v408_v40  ;;  %s1008_s21 = sshll.u32 %s1201_s8, 4  ;;  %s1009_s21 = int_to_ptr.vmem [resolvable:$true] %s1008_s21 }
 0x286   :  { %v417_v52 = vrot.slane %v382_v0, %v416_v41  ;;  %v389_v53 = vrot.slane %v382_v0, %v388_v42  ;;  %v397_v54 = vrot.slane %v382_v0, %v396_v43  ;;  %v393_v55 = vrot.slane %v382_v0, %v392_v44  ;;  %s1167_s22 = scalar_lea.vmem %s1009_s21, 1536  ;;  %p1172_p11 = scmp.lt.s32.totalorder %s1009_s21, %s1009_s21 }
 0x287   :  { %v401_v56 = vrot.slane %v382_v0, %v400_v45  ;;  %p1168_p10 = scmp.ne.s32.totalorder %s1009_s21, %s1167_s22  ;;  %p1173_p12 = scmp.lt.s32.totalorder %s1167_s22, %s1167_s22 }
 0x289   :  { %p1174_p13 = por %p1173_p12, %p1172_p11 }
 0x28b   :  { %p1175_p0 = pnand %p1174_p13, %p1168_p10 }
 0x33a   :  { %v553_v34 = vpop.f32.mrf.mxu1  ;;  %v624_v35 = vpop.f32.mrf.mxu0 }
 0x33b   :  { %v554_v4 = vadd.f32 %v553_v34, %v389_v53  ;;  %v625_v5 = vadd.f32 %v624_v35, %v397_v54 }
 0x33c   :  { %v555_v38 = vpop.f32.mrf.mxu1  ;;  %v626_v39 = vpop.f32.mrf.mxu0 }
 0x33d   :  { %v556_v8 = vadd.f32 %v555_v38, %v393_v55  ;;  %v627_v9 = vadd.f32 %v626_v39, %v401_v56 }
 0x340   :  { %v695_v49 = vpop.f32.mrf.mxu1  ;;  %v766_v50 = vpop.f32.mrf.mxu0 }
 0x341   :  { %v696_v61 = vadd.f32 %v695_v49, %v405_v46  ;;  %v767_v62 = vadd.f32 %v766_v50, %v413_v47 }
 0x342   :  { %v697_v57 = vpop.f32.mrf.mxu1  ;;  %v768_v58 = vpop.f32.mrf.mxu0 }
 0x343   :  { %v698_v63 = vadd.f32 %v697_v57, %v409_v51  ;;  %v769_v1 = vadd.f32 %v768_v58, %v417_v52  ;;  %v913_v12 = vmax.f32 %v554_v4, %v696_v61  ;;  %v915_v13 = vmax.f32 %v625_v5, %v767_v62 }
 0x345   :  { %v837_v6 = vpop.f32.mrf.mxu1  ;;  %v908_v7 = vpop.f32.mrf.mxu0  ;;  %v914_v16 = vmax.f32 %v556_v8, %v698_v63  ;;  %v916_v17 = vmax.f32 %v627_v9, %v769_v1 }
 0x346   :  { %v838_v10 = vadd.f32 %v837_v6, %v421_v59  ;;  %v909_v11 = vadd.f32 %v908_v7, %v429_v60 }
 0x347   :  { %v839_v14 = vpop.f32.mrf.mxu1  ;;  %v910_v15 = vpop.f32.mrf.mxu0 }
 0x348   :  { %v840_v18 = vadd.f32 %v839_v14, %v425_v2  ;;  %v911_v19 = vadd.f32 %v910_v15, %v433_v3  ;;  %v917_v20 = vmax.f32 %v913_v12, %v838_v10  ;;  %v919_v21 = vmax.f32 %v915_v13, %v909_v11 }
 0x34a   :  { %v918_v22 = vmax.f32 %v914_v16, %v840_v18  ;;  %v920_v23 = vmax.f32 %v916_v17, %v911_v19 }
 0x34c   :  { %v921_v24 = vmax.f32 %v917_v20, %v918_v22  ;;  %v922_v25 = vmax.f32 %v919_v21, %v920_v23 }
 0x34e   :  { %v923_v26 = vmax.f32 %v921_v24, %v922_v25 }
 0x350   :  { %924 = vmax.xlane.f32.xlu0 %v923_v26 }
 0x3d9   :  { %v925_v27 = vpop.xlane.xlu0 %924 }
 0x3da   :  { %v926_v28 = vsub.f32 %v554_v4, %v925_v27  ;;  %v927_v29 = vsub.f32 %v556_v8, %v925_v27  ;;  %v928_v30 = vsub.f32 %v625_v5, %v925_v27  ;;  %v929_v31 = vsub.f32 %v627_v9, %v925_v27 }
 0x3db   :  { %v930_v34 = vsub.f32 %v696_v61, %v925_v27  ;;  %v931_v36 = vsub.f32 %v698_v63, %v925_v27  ;;  %v932_v38 = vsub.f32 %v767_v62, %v925_v27  ;;  %v933_v40 = vsub.f32 %v769_v1, %v925_v27 }
 0x3dc   :  { %v938_v32 = vmul.f32 1.442695, %v926_v28  ;;  %v940_v33 = vmul.f32 1.442695, %v927_v29  ;;  %v942_v35 = vmul.f32 1.442695, %v928_v30  ;;  %v934_v42 = vsub.f32 %v838_v10, %v925_v27 }
 0x3dd   :  { %v944_v37 = vmul.f32 1.442695, %v929_v31  ;;  %v946_v39 = vmul.f32 1.442695, %v930_v34  ;;  %v948_v41 = vmul.f32 1.442695, %v931_v36  ;;  %v935_v0 = vsub.f32 %v840_v18, %v925_v27 }
 0x3de   :  { %1101 = vpow2.f32 %v938_v32  ;;  %v950_v43 = vmul.f32 1.442695, %v932_v38  ;;  %v952_v44 = vmul.f32 1.442695, %v933_v40  ;;  %v936_v45 = vsub.f32 %v909_v11, %v925_v27 }
 0x3df   :  { %1103 = vpow2.f32 %v940_v33  ;;  %v954_v46 = vmul.f32 1.442695, %v934_v42  ;;  %v937_v48 = vsub.f32 %v911_v19, %v925_v27  ;;  %v956_v49 = vmul.f32 1.442695, %v935_v0 }
 0x3e0   :  { %1105 = vpow2.f32 %v942_v35  ;;  %v958_v51 = vmul.f32 1.442695, %v936_v45 }
 0x3e1   :  { %1107 = vpow2.f32 %v944_v37  ;;  %v960_v54 = vmul.f32 1.442695, %v937_v48 }
 0x3e2   :  { %1109 = vpow2.f32 %v946_v39 }
 0x3e3   :  { %1111 = vpow2.f32 %v948_v41 }
 0x3e4   :  { %1113 = vpow2.f32 %v950_v43 }
 0x3e5   :  { %1115 = vpow2.f32 %v952_v44 }
 0x3e6   :  { %1117 = vpow2.f32 %v954_v46 }
 0x3e7   :  { %1119 = vpow2.f32 %v956_v49 }
 0x3e8   :  { %1121 = vpow2.f32 %v958_v51 }
 0x3e9   :  { %1123 = vpow2.f32 %v960_v54 }
 0x3eb   :  { %v1102_v47 = vpop.eup %1101 }
 0x3ec   :  { %v1104_v50 = vpop.eup %1103 }
 0x3ed   :  { %v962_v52 = vadd.f32 %v1104_v50, %v1102_v47  ;;  %v1106_v53 = vpop.eup %1105 }
 0x3ee   :  { %v1108_v56 = vpop.eup %1107 }
 0x3ef   :  { %v963_v55 = vadd.f32 %v1106_v53, %v962_v52  ;;  %v1110_v58 = vpop.eup %1109 }
 0x3f0   :  { %v1112_v60 = vpop.eup %1111 }
 0x3f1   :  { %v964_v57 = vadd.f32 %v1108_v56, %v963_v55  ;;  %v1114_v62 = vpop.eup %1113 }
 0x3f2   :  { %v1116_v1 = vpop.eup %1115 }
 0x3f3   :  { %v965_v59 = vadd.f32 %v1110_v58, %v964_v57  ;;  %v1118_v3 = vpop.eup %1117 }
 0x3f4   :  { %v1120_v5 = vpop.eup %1119 }
 0x3f5   :  { %v966_v61 = vadd.f32 %v1112_v60, %v965_v59  ;;  %v1122_v7 = vpop.eup %1121 }
 0x3f6   :  { %v1124_v9 = vpop.eup %1123 }
 0x3f7   :  { %v967_v63 = vadd.f32 %v1114_v62, %v966_v61 }
 0x3f9   :  { %v968_v2 = vadd.f32 %v1116_v1, %v967_v63 }
 0x3fb   :  { %v969_v4 = vadd.f32 %v1118_v3, %v968_v2 }
 0x3fd   :  { %v970_v6 = vadd.f32 %v1120_v5, %v969_v4 }
 0x3ff   :  { %v971_v8 = vadd.f32 %v1122_v7, %v970_v6 }
 0x401   :  { %v972_v10 = vadd.f32 %v1124_v9, %v971_v8 }
 0x403   :  { %973 = vadd.xlane.f32.xlu0 %v972_v10 }
 0x48c   :  { %v974_v11 = vpop.xlane.xlu0 %973 }
 0x48d   :  { %1125 = vrcp.f32 %v974_v11 }
 0x49a   :  { %v1126_v12 = vpop.eup %1125 }
 0x49b   :  { %v977_v13 = vmul.f32 %v1126_v12, %v1102_v47  ;;  %v978_v14 = vmul.f32 %v1126_v12, %v1104_v50  ;;  %v979_v15 = vmul.f32 %v1126_v12, %v1106_v53  ;;  %v980_v16 = vmul.f32 %v1126_v12, %v1108_v56 }
 0x49c   :  { %v981_v17 = vmul.f32 %v1126_v12, %v1110_v58  ;;  %v982_v18 = vmul.f32 %v1126_v12, %v1112_v60  ;;  %v983_v19 = vmul.f32 %v1126_v12, %v1114_v62  ;;  %v984_v20 = vmul.f32 %v1126_v12, %v1116_v1 }
 0x49d   :  { %v985_v21 = vmul.f32 %v1126_v12, %v1118_v3  ;;  %v986_v22 = vmul.f32 %v1126_v12, %v1120_v5  ;;  %v987_v23 = vmul.f32 %v1126_v12, %v1122_v7  ;;  %v988_v24 = vmul.f32 %v1126_v12, %v1124_v9  ;;  %989 = vst [vmem:[#allocation7] sm:$0xff] %v977_v13 }
 0x49e   :  { %990 = vst [vmem:[#allocation7 + $0x8] sm:$0xff] %v978_v14  ;;  %991 = vst [vmem:[#allocation7 + $0x10] sm:$0xff] %v979_v15 }
 0x49f   :  { %992 = vst [vmem:[#allocation7 + $0x18] sm:$0xff] %v980_v16  ;;  %993 = vst [vmem:[#allocation7 + $0x20] sm:$0xff] %v981_v17 }
 0x4a0   :  { %994 = vst [vmem:[#allocation7 + $0x28] sm:$0xff] %v982_v18  ;;  %995 = vst [vmem:[#allocation7 + $0x30] sm:$0xff] %v983_v19 }
 0x4a1   :  { %996 = vst [vmem:[#allocation7 + $0x38] sm:$0xff] %v984_v20  ;;  %997 = vst [vmem:[#allocation7 + $0x40] sm:$0xff] %v985_v21 }
 0x4a2   :  { %998 = vst [vmem:[#allocation7 + $0x48] sm:$0xff] %v986_v22  ;;  %999 = vst [vmem:[#allocation7 + $0x50] sm:$0xff] %v987_v23 }
 0x4a3   :  { %1001 = vst.msk [vmem:[#allocation7 + $0x58] sm:$0xff] %vm1000_vm4, %v988_v24 }
 0x4a4   :  { %1178 = shalt.err (!%p1175_p0)
}
 0x4a5   :  { %1011 = dma.vmem_to_hbm [thread:$0]  %s1009_s21, 1536, %s1392_s9, [#allocation4]  }
 0x4a6   :  { %1191 = dma.done.wait [#allocation4], 1536  }
 0x4a7   :  { %1192 = vsyncadd [#allocation4], 4294965760 }
 0x4a8   :  { %1015 = vsyncpa [#allocation3], 1 }
 0x4a9   :  { %1016 = vsyncpa [#allocation6], 1 }
 0x4aa   :  { %1017 = vsyncpa [#allocation4], 1 }

</bundles_post_ra>
